<compile_context>
chip_gen: v7x
topology: tpu7x:2x2x1
jax: 0.10.0
libtpu: 0.0.40
codegen_flags: <defaults>
</compile_context>

<pallas_src>
import functools

import jax
import jax.numpy as jnp
from jax import lax
from jax.experimental import pallas as pl
from jax.experimental.pallas import tpu as pltpu


_LANE = 128
_SUBLANE = 16                 # batch-axis alignment (covers bf16 (16,128) packing)
_VMEM_BUDGET = 24 << 20       # keep live set v7x-safe (64 MiB physical VMEM)
_VMEM_LIMIT = 48 << 20        # explicit scoped limit (v5e default is only 16 MiB)


def _round_up(n, m):
    return ((n + m - 1) // m) * m


def _mlp_kernel(x_ref, w1_ref, b1_ref, w2_ref, b2_ref, o_ref, *, sub):
    """One batch tile: y = relu(x @ W1 + b1) @ W2 + b2.

    x_ref : (TM, D_in_p)   f32   -- streamed; cast to bf16 in-kernel
    w1_ref: (D_in_p, H_p)  bf16  -- VMEM-resident across the grid
    b1_ref: (1, H_p)       f32
    w2_ref: (H_p, D_out_p) bf16  -- VMEM-resident across the grid
    b2_ref: (1, D_out_p)   f32
    o_ref : (TM, D_out_p)  bf16  -- lane-dense store (halved writeback vs f32)

    The tile is processed in `sub`-row chunks so the live f32 hidden activation
    stays small (avoids spilling the whole vreg file at tile_m=512).
    """
    n_sub = x_ref.shape[0] // sub
    w1 = w1_ref[...]
    w2 = w2_ref[...]
    b1 = b1_ref[...]
    b2 = b2_ref[...]

    def body(c, carry):
        r0 = pl.multiple_of(c * sub, sub)
        xc = x_ref[pl.ds(r0, sub), :].astype(jnp.bfloat16)       # VPU pack, hides under MXU
        h = jnp.dot(xc, w1, preferred_element_type=jnp.float32)  # bf16 x bf16 -> f32 (MXU)
        h = jnp.maximum(h + b1, 0.0)                              # bias + ReLU in f32 (VPU)
        y = jnp.dot(h.astype(jnp.bfloat16), w2,
                    preferred_element_type=jnp.float32)           # bf16 x bf16 -> f32 (MXU)
        o_ref[pl.ds(r0, sub), :] = (y + b2).astype(o_ref.dtype)
        return carry

    lax.fori_loop(0, n_sub, body, 0, unroll=True)


def prepare_params(w1, b1, w2, b2):
    """One-time pad + bf16 cast of the Linear parameters (hoisted out of forward).

    Zero padding is load-bearing for correctness: padded K lanes contribute 0 to
    the dots, and padded b1 lanes give relu(0 + 0) = 0, so padded hidden lanes
    add nothing to the second matmul.
    """
    D_in, H = w1.shape
    H2, D_out = w2.shape
    assert H2 == H and b1.shape == (H,) and b2.shape == (D_out,)
    D_in_p, H_p, D_out_p = (_round_up(d, _LANE) for d in (D_in, H, D_out))

    w1_p = jnp.pad(w1, ((0, D_in_p - D_in), (0, H_p - H))).astype(jnp.bfloat16)
    w2_p = jnp.pad(w2, ((0, H_p - H), (0, D_out_p - D_out))).astype(jnp.bfloat16)
    b1_p = jnp.pad(b1, (0, H_p - H)).reshape(1, H_p).astype(jnp.float32)
    b2_p = jnp.pad(b2, (0, D_out_p - D_out)).reshape(1, D_out_p).astype(jnp.float32)

    return {"w1": w1_p, "b1": b1_p, "w2": w2_p, "b2": b2_p,
            "d_in": D_in, "d_out": D_out}


def _pick_tile_m(B, tile_m_max):
    """Adaptive batch tile: avoid up-to-2x over-padding just above a boundary."""
    b_aligned = _round_up(B, _SUBLANE)
    if b_aligned <= tile_m_max:
        return b_aligned            # single tile; only sublane-alignment padding
    tm = tile_m_max
    while tm > _SUBLANE:
        waste = _round_up(B, tm) - B
        if 8 * waste <= B:          # accept <= ~12.5% padded-row overhead
            return tm
        tm //= 2
    return _SUBLANE


def _vmem_estimate(tm, d_in_p, h_p, d_out_p):
    # double-buffered x (f32) and out (bf16) tiles + resident weights/biases
    # (counted x2 for buffering headroom) + f32 hidden intermediate.
    return (2 * tm * d_in_p * 4
            + 2 * tm * d_out_p * 2
            + 2 * (d_in_p * h_p + h_p * d_out_p) * 2
            + 2 * (h_p + d_out_p) * 4
            + tm * h_p * 4)


def neural_net_forward(x, params, *, tile_m=512):
    """x: (B, D_in) -> (B, D_out); forward of Linear -> ReLU -> Linear."""
    B, D_in = x.shape
    assert D_in == params["d_in"], "input feature dim mismatch"
    w1_p, b1_p, w2_p, b2_p = params["w1"], params["b1"], params["w2"], params["b2"]
    D_in_p, H_p = w1_p.shape
    D_out_p = w2_p.shape[1]
    D_out = params["d_out"]

    # Batch tiling: limit over-padding, then shrink for the v7x VMEM budget.
    tm = _pick_tile_m(B, tile_m)
    while _vmem_estimate(tm, D_in_p, H_p, D_out_p) > _VMEM_BUDGET and tm > _SUBLANE:
        tm = max(_SUBLANE, _round_up(tm // 2, _SUBLANE))
    B_p = _round_up(B, tm)

    # Activations stay f32 in HBM; the bf16 cast happens in-kernel.
    x_f32 = x.astype(jnp.float32)
    if B_p == B and D_in_p == D_in:
        x_p = x_f32
    else:
        x_p = jnp.pad(x_f32, ((0, B_p - B), (0, D_in_p - D_in)))

    sub = 128 if (tm > 128 and tm % 128 == 0) else tm
    kernel = functools.partial(_mlp_kernel, sub=sub)

    out_p = pl.pallas_call(
        kernel,
        out_shape=jax.ShapeDtypeStruct((B_p, D_out_p), jnp.bfloat16),
        grid=(B_p // tm,),
        in_specs=[
            pl.BlockSpec((tm, D_in_p), lambda i: (i, 0)),        # x: streamed per tile
            pl.BlockSpec((D_in_p, H_p), lambda i: (0, 0)),       # W1: VMEM-resident
            pl.BlockSpec((1, H_p), lambda i: (0, 0)),            # b1: VMEM-resident
            pl.BlockSpec((H_p, D_out_p), lambda i: (0, 0)),      # W2: VMEM-resident
            pl.BlockSpec((1, D_out_p), lambda i: (0, 0)),        # b2: VMEM-resident
        ],
        out_specs=pl.BlockSpec((tm, D_out_p), lambda i: (i, 0)),
        compiler_params=pltpu.CompilerParams(
            # >=2 batch tiles shard across v7x's two TensorCores; at grid=(1,)
            # this is a harmless no-op.
            dimension_semantics=("parallel",),
            vmem_limit_bytes=_VMEM_LIMIT,
        ),
    )(x_p, w1_p, b1_p, w2_p, b2_p)

    # Strip batch/lane padding and restore the caller's dtype outside the kernel.
    # Never expose the padded slab (padded batch rows hold garbage).
    return out_p[:B, :D_out].astype(x.dtype)


if __name__ == "__main__":
    # Small shapes implied by the module's forward: (batch, input_size).
    batch, input_size, hidden_size, output_size = 8, 32, 64, 16

    key = jax.random.PRNGKey(0)
    kx, kw1, kb1, kw2, kb2 = jax.random.split(key, 5)

    x = jax.random.normal(kx, (batch, input_size), dtype=jnp.float32)

    # PyTorch nn.Linear stores weight as (out, in); kernel consumes (in, out).
    w1_torch = jax.random.normal(kw1, (hidden_size, input_size), jnp.float32) * 0.1
    b1 = jax.random.normal(kb1, (hidden_size,), jnp.float32) * 0.1
    w2_torch = jax.random.normal(kw2, (output_size, hidden_size), jnp.float32) * 0.1
    b2 = jax.random.normal(kb2, (output_size,), jnp.float32) * 0.1
    w1 = w1_torch.T
    w2 = w2_torch.T

    # One-time parameter prep (pad + bf16 cast), reused across forward calls.
    params = prepare_params(w1, b1, w2, b2)

    out = neural_net_forward(x, params)
    out = jax.block_until_ready(out)
    assert out.shape == (batch, output_size)
    assert out.dtype == x.dtype

    # Reference 1: the bf16-matmul semantics the kernel implements (bf16 output).
    xb, w1b, w2b = (a.astype(jnp.bfloat16) for a in (x, w1, w2))
    h_ref = jnp.maximum(
        jnp.dot(xb, w1b, preferred_element_type=jnp.float32) + b1, 0.0)
    ref_bf16 = jnp.dot(h_ref.astype(jnp.bfloat16), w2b,
                       preferred_element_type=jnp.float32) + b2
    assert jnp.allclose(out, ref_bf16, atol=1e-2, rtol=1e-2)

    # Reference 2: pure-f32 module semantics (loose tolerance for the bf16 path).
    ref_f32 = jnp.maximum(x @ w1 + b1, 0.0) @ w2 + b2
    assert jnp.allclose(out, ref_f32, atol=3e-2, rtol=3e-2)

    print("KERNEL_OK")
</pallas_src>

<mosaic_0001>
module attributes {stable_mosaic.version = 11 : i64} {
  func.func @_mlp_kernel(%arg0: i32, %arg1: memref<16x128xf32, #tpu.memory_space<vmem>>, %arg2: memref<128x128xbf16, #tpu.memory_space<vmem>>, %arg3: memref<1x128xf32, #tpu.memory_space<vmem>>, %arg4: memref<128x128xbf16, #tpu.memory_space<vmem>>, %arg5: memref<1x128xf32, #tpu.memory_space<vmem>>, %arg6: memref<16x128xbf16, #tpu.memory_space<vmem>>) attributes {dimension_semantics = [#tpu.dimension_semantics<parallel>], iteration_bounds = array<i64: 1>, scalar_prefetch = 0 : i64, scratch_operands = 0 : i64, tpu.core_type = #tpu.core_type<tc>, window_params = [{transform_indices = @transform_0, window_bounds = array<i64: 16, 128>}, {pipeline_mode = #tpu.pipeline_mode<synchronous>, transform_indices = @transform_1, window_bounds = array<i64: 128, 128>}, {pipeline_mode = #tpu.pipeline_mode<synchronous>, transform_indices = @transform_2, window_bounds = array<i64: 1, 128>}, {pipeline_mode = #tpu.pipeline_mode<synchronous>, transform_indices = @transform_3, window_bounds = array<i64: 128, 128>}, {pipeline_mode = #tpu.pipeline_mode<synchronous>, transform_indices = @transform_4, window_bounds = array<i64: 1, 128>}, {transform_indices = @transform_5, window_bounds = array<i64: 16, 128>}]} {
    %c0 = arith.constant 0 : index
    %c0_0 = arith.constant 0 : index
    %0 = vector.load %arg2[%c0, %c0_0] : memref<128x128xbf16, #tpu.memory_space<vmem>>, vector<128x128xbf16>
    %c0_1 = arith.constant 0 : index
    %c0_2 = arith.constant 0 : index
    %1 = vector.load %arg4[%c0_1, %c0_2] : memref<128x128xbf16, #tpu.memory_space<vmem>>, vector<128x128xbf16>
    %c0_3 = arith.constant 0 : index
    %c0_4 = arith.constant 0 : index
    %2 = vector.load %arg3[%c0_3, %c0_4] : memref<1x128xf32, #tpu.memory_space<vmem>>, vector<1x128xf32>
    %c0_5 = arith.constant 0 : index
    %c0_6 = arith.constant 0 : index
    %3 = vector.load %arg5[%c0_5, %c0_6] : memref<1x128xf32, #tpu.memory_space<vmem>>, vector<1x128xf32>
    %c0_i32 = arith.constant 0 : i32
    %c16_i32 = arith.constant 16 : i32
    %4 = arith.muli %c0_i32, %c16_i32 : i32
    %5 = tpu.assume_multiple %4, 16 : i32
    %6 = arith.index_cast %5 : i32 to index
    %c0_7 = arith.constant 0 : index
    %7 = vector.load %arg1[%6, %c0_7] : memref<16x128xf32, #tpu.memory_space<vmem>>, vector<16x128xf32>
    %8 = arith.truncf %7 : vector<16x128xf32> to vector<16x128xbf16>
    %cst = arith.constant dense<0.000000e+00> : vector<16x128xf32>
    %9 = tpu.matmul %8, %0, %cst {dimension_numbers = #tpu.dot_dimension_numbers<[1], [0], [0], [1], [0, 0, 1, 1], [], []>} : vector<16x128xbf16>, vector<128x128xbf16>, vector<16x128xf32> -> vector<16x128xf32>
    %10 = vector.broadcast %2 : vector<1x128xf32> to vector<16x128xf32>
    %11 = arith.addf %9, %10 : vector<16x128xf32>
    %cst_8 = arith.constant 0.000000e+00 : f32
    %12 = vector.broadcast %cst_8 : f32 to vector<16x128xf32>
    %13 = arith.maximumf %11, %12 : vector<16x128xf32>
    %14 = arith.truncf %13 : vector<16x128xf32> to vector<16x128xbf16>
    %cst_9 = arith.constant dense<0.000000e+00> : vector<16x128xf32>
    %15 = tpu.matmul %14, %1, %cst_9 {dimension_numbers = #tpu.dot_dimension_numbers<[1], [0], [0], [1], [0, 0, 1, 1], [], []>} : vector<16x128xbf16>, vector<128x128xbf16>, vector<16x128xf32> -> vector<16x128xf32>
    %16 = vector.broadcast %3 : vector<1x128xf32> to vector<16x128xf32>
    %17 = arith.addf %15, %16 : vector<16x128xf32>
    %18 = arith.truncf %17 : vector<16x128xf32> to vector<16x128xbf16>
    %19 = arith.index_cast %5 : i32 to index
    %c0_10 = arith.constant 0 : index
    %20 = vector.load %arg6[%19, %c0_10] : memref<16x128xbf16, #tpu.memory_space<vmem>>, vector<16x128xbf16>
    tpu.vector_store %arg6[%19, %c0_10], %18 {strides = array<i32>} : memref<16x128xbf16, #tpu.memory_space<vmem>>, vector<16x128xbf16>,
    %c1_i32 = arith.constant 1 : i32
    return
  }
  func.func @transform_0(%arg0: i32) -> (i32, i32) {
    %c0_i32 = arith.constant 0 : i32
    %c0_i32_0 = arith.constant 0 : i32
    return %arg0, %c0_i32 : i32, i32
  }
  func.func @transform_1(%arg0: i32) -> (i32, i32) {
    %c0_i32 = arith.constant 0 : i32
    %c0_i32_0 = arith.constant 0 : i32
    %c0_i32_1 = arith.constant 0 : i32
    return %c0_i32, %c0_i32_0 : i32, i32
  }
  func.func @transform_2(%arg0: i32) -> (i32, i32) {
    %c0_i32 = arith.constant 0 : i32
    %c0_i32_0 = arith.constant 0 : i32
    %c0_i32_1 = arith.constant 0 : i32
    return %c0_i32, %c0_i32_0 : i32, i32
  }
  func.func @transform_3(%arg0: i32) -> (i32, i32) {
    %c0_i32 = arith.constant 0 : i32
    %c0_i32_0 = arith.constant 0 : i32
    %c0_i32_1 = arith.constant 0 : i32
    return %c0_i32, %c0_i32_0 : i32, i32
  }
  func.func @transform_4(%arg0: i32) -> (i32, i32) {
    %c0_i32 = arith.constant 0 : i32
    %c0_i32_0 = arith.constant 0 : i32
    %c0_i32_1 = arith.constant 0 : i32
    return %c0_i32, %c0_i32_0 : i32, i32
  }
  func.func @transform_5(%arg0: i32) -> (i32, i32) {
    %c0_i32 = arith.constant 0 : i32
    %c0_i32_0 = arith.constant 0 : i32
    return %arg0, %c0_i32 : i32, i32
  }
}

</mosaic_0001>

<bundles_post_ra>
// kernel: tpu_custom_call.1
= control target key start
LH: loop header
LB: loop body
LE: loop exit
PB: predicated region body
PF: predicated region fallthrough
CT: control target
= control target key end

     0   :  { %10 = vsyncpa [#allocation3], 0  ;;  %s629_s0 = inlined_call_operand.hbm [shape: f32[16,128], index: 0, kind: input, shape index: {}]   ;;  %s630_s1 = inlined_call_operand.hbm [shape: bf16[128,128], index: 1, kind: input, shape index: {}]   ;;  %s631_s2 = inlined_call_operand.vmem [shape: f32[1,128], index: 2, kind: input, shape index: {}]   ;;  %s632_s3 = inlined_call_operand.hbm [shape: bf16[128,128], index: 3, kind: input, shape index: {}]   ;;  %s633_s4 = inlined_call_operand.vmem [shape: f32[1,128], index: 4, kind: input, shape index: {}]   ;;  %s634_s5 = inlined_call_operand.hbm [shape: bf16[16,128], index: 5, kind: output, shape index: {}]  }
   0x1   :  { %11 = vsyncpa [#allocation6], 0 }
   0x2   :  { %12 = vsyncpa [#allocation4], 0  ;;  %s526_s18 = smov [#allocation5]   ;;  %s432_s22 = scalar_lea.hbm %s630_s1, 1024 }
   0x3   :  { %s30_s19 = sshll.u32 %s526_s18, 4  ;;  %p433_p0 = scmp.ne.s32.totalorder %s630_s1, %s432_s22  ;;  %s31_s19 = int_to_ptr.vmem [resolvable:$true] %s30_s19 }
   0x4   :  { %p436_p1 = scmp.lt.u32.totalorder %s432_s22, %s630_s1 }
   0x6   :  { %p438_p2 = pnand %p436_p1, %p433_p0 }
   0x8   :  { %441 = shalt.err (!%p438_p2)
}
   0x9   :  { %s442_s27 = scalar_lea.vmem %s31_s19, 1024  ;;  %p447_p4 = scmp.lt.s32.totalorder %s31_s19, %s31_s19 }
   0xa   :  { %p443_p3 = scmp.ne.s32.totalorder %s31_s19, %s442_s27  ;;  %p448_p5 = scmp.lt.s32.totalorder %s442_s27, %s442_s27 }
   0xc   :  { %p449_p6 = por %p448_p5, %p447_p4 }
   0xe   :  { %p450_p7 = pnand %p449_p6, %p443_p3 }
  0x10   :  { %453 = shalt.err (!%p450_p7)
}
  0x11   :  { %s527_s28 = smov 64   ;;  %s528_s29 = smov 4  }
  0x12   :  { %36 = dma.hbm_to_vmem [thread:$0]  %s630_s1, 1024, %s31_s19, [#allocation6], %s527_s28, %s527_s28, %s528_s29  }
  0x13   :  { %s529_s7 = smov [#allocation2]   ;;  %s454_s11 = scalar_lea.hbm %s629_s0, 256 }
  0x14   :  { %s18_s8 = sshll.u32 %s529_s7, 4  ;;  %p455_p8 = scmp.ne.s32.totalorder %s629_s0, %s454_s11  ;;  %s19_s8 = int_to_ptr.vmem [resolvable:$true] %s18_s8 }
  0x15   :  { %p458_p9 = scmp.lt.u32.totalorder %s454_s11, %s629_s0 }
  0x17   :  { %p460_p10 = pnand %p458_p9, %p455_p8 }
  0x19   :  { %463 = shalt.err (!%p460_p10)
}
  0x1a   :  { %s464_s16 = scalar_lea.vmem %s19_s8, 256  ;;  %p469_p12 = scmp.lt.s32.totalorder %s19_s8, %s19_s8 }
  0x1b   :  { %p465_p11 = scmp.ne.s32.totalorder %s19_s8, %s464_s16  ;;  %p470_p13 = scmp.lt.s32.totalorder %s464_s16, %s464_s16 }
  0x1d   :  { %p471_p0 = por %p470_p13, %p469_p12 }
  0x1f   :  { %p472_p1 = pnand %p471_p0, %p465_p11 }
  0x21   :  { %475 = shalt.err (!%p472_p1)
}
  0x22   :  { %s530_s1 = smov 128   ;;  %s531_s17 = smov 8  }
  0x23   :  { %24 = dma.hbm_to_vmem [thread:$0]  %s629_s0, 256, %s19_s8, [#allocation3], %s530_s1, %s530_s1, %s531_s17  }
  0x24   :  { %s532_s20 = smov [#allocation7]   ;;  %s476_s24 = scalar_lea.hbm %s632_s3, 1024 }
  0x25   :  { %s44_s21 = sshll.u32 %s532_s20, 4  ;;  %p477_p2 = scmp.ne.s32.totalorder %s632_s3, %s476_s24  ;;  %s45_s21 = int_to_ptr.vmem [resolvable:$true] %s44_s21 }
  0x26   :  { %p480_p3 = scmp.lt.u32.totalorder %s476_s24, %s632_s3 }
  0x28   :  { %p482_p4 = pnand %p480_p3, %p477_p2 }
  0x2a   :  { %485 = shalt.err (!%p482_p4)
}
  0x2b   :  { %s486_s6 = scalar_lea.vmem %s45_s21, 1024  ;;  %p491_p6 = scmp.lt.s32.totalorder %s45_s21, %s45_s21 }
  0x2c   :  { %p487_p5 = scmp.ne.s32.totalorder %s45_s21, %s486_s6  ;;  %p492_p7 = scmp.lt.s32.totalorder %s486_s6, %s486_s6 }
  0x2e   :  { %p493_p8 = por %p492_p7, %p491_p6 }
  0x30   :  { %p494_p9 = pnand %p493_p8, %p487_p5 }
  0x32   :  { %497 = shalt.err (!%p494_p9)
}
  0x33   :  { %50 = dma.hbm_to_vmem [thread:$0]  %s632_s3, 1024, %s45_s21, [#allocation6], %s527_s28, %s527_s28, %s528_s29  }
  0x34   :  { %520 = dma.done.wait [#allocation3], 256  }
  0x35   :  { %521 = vsyncadd [#allocation3], 4294967040 }
  0x36   :  { %522 = dma.done.wait [#allocation6], 2048  }
  0x37   :  { %523 = vsyncadd [#allocation6], 4294965248  ;;  %v533_v0 = vmov 0.0   ;;  %vm534_vm0 = vmmov 0   ;;  %v416_v1 = vld [vmem:[#allocation5] sm:$0xff]   ;;  %v417_v2 = vld [vmem:[#allocation5 + $0x8] sm:$0xff]  }
  0x38   :  { %366 = vmatprep.subr.bf16.mxu0 %v533_v0  ;;  %382 = vmatprep.mubr.msk.bf16.mxu0 %vm534_vm0, %v533_v0  ;;  %v418_v3 = vld [vmem:[#allocation5 + $0x10] sm:$0xff]   ;;  %v424_v4 = vld [vmem:[#allocation7] sm:$0xff]   ;;  %v419_v5 = vld [vmem:[#allocation5 + $0x18] sm:$0xff]   ;;  %s535_s11 = smov [#allocation8]  }
  0x39   :  { %386 = vmatprep.subr.bf16.mxu1 %v533_v0  ;;  %402 = vmatprep.mubr.msk.bf16.mxu1 %vm534_vm0, %v533_v0  ;;  %v425_v6 = vld [vmem:[#allocation7 + $0x8] sm:$0xff]   ;;  %v420_v7 = vld [vmem:[#allocation5 + $0x20] sm:$0xff]   ;;  %v426_v8 = vld [vmem:[#allocation7 + $0x10] sm:$0xff]   ;;  %s308_s12 = sshll.u32 %s535_s11, 4  ;;  %s309_s12 = int_to_ptr.vmem [resolvable:$true] %s308_s12 }
  0x3a   :  { %367 = vmatpush3.bf16.msra.mxu0 %v416_v1  ;;  %387 = vmatpush3.bf16.msra.mxu1 %v424_v4  ;;  %v421_v9 = vld [vmem:[#allocation5 + $0x28] sm:$0xff]   ;;  %v427_v10 = vld [vmem:[#allocation7 + $0x18] sm:$0xff]   ;;  %v422_v11 = vld [vmem:[#allocation5 + $0x30] sm:$0xff]   ;;  %p503_p11 = scmp.lt.s32.totalorder %s309_s12, %s309_s12 }
  0x3b   :  { %368 = vmatprep.subr.bf16.mxu0 %v533_v0  ;;  %388 = vmatprep.subr.bf16.mxu1 %v533_v0  ;;  %v428_v12 = vld [vmem:[#allocation7 + $0x20] sm:$0xff]   ;;  %v423_v13 = vld [vmem:[#allocation5 + $0x38] sm:$0xff]   ;;  %v97_v14 = vld [vmem:[#allocation2] sm:$0xff] }
  0x3c   :  { %v98_v15 = vld [vmem:[#allocation2 + $0x8] sm:$0xff]  ;;  %v429_v16 = vld [vmem:[#allocation7 + $0x28] sm:$0xff]   ;;  %v430_v18 = vld [vmem:[#allocation7 + $0x30] sm:$0xff]  }
  0x3d   :  { %v99_v17 = vpack.c.bf16 %v98_v15, %v97_v14  ;;  %v431_v19 = vld [vmem:[#allocation7 + $0x38] sm:$0xff]   ;;  %v321_v20 = vld [vmem:[%s631_s2] ss:$0 sm:$0xff]  ;;  %s498_s2 = scalar_lea.vmem %s309_s12, 128 }
  0x3e   :  { %369 = vmatpush3.bf16.msra.mxu0 %v417_v2  ;;  %389 = vmatpush3.bf16.msra.mxu1 %v425_v6  ;;  %v330_v30 = vld [vmem:[%s633_s4] ss:$0 sm:$0xff]  ;;  %p499_p10 = scmp.ne.s32.totalorder %s309_s12, %s498_s2  ;;  %p504_p12 = scmp.lt.s32.totalorder %s498_s2, %s498_s2 }
  0x3f   :  { %370 = vmatprep.subr.bf16.mxu0 %v533_v0  ;;  %390 = vmatprep.subr.bf16.mxu1 %v533_v0 }
  0x40   :  { %p505_p13 = por %p504_p12, %p503_p11 }
  0x42   :  { %371 = vmatpush3.bf16.msra.mxu0 %v418_v3  ;;  %391 = vmatpush3.bf16.msra.mxu1 %v426_v8  ;;  %p506_p0 = pnand %p505_p13, %p499_p10 }
  0x43   :  { %372 = vmatprep.subr.bf16.mxu0 %v533_v0  ;;  %392 = vmatprep.subr.bf16.mxu1 %v533_v0 }
  0x46   :  { %373 = vmatpush3.bf16.msra.mxu0 %v419_v5  ;;  %393 = vmatpush3.bf16.msra.mxu1 %v427_v10 }
  0x47   :  { %374 = vmatprep.subr.bf16.mxu0 %v533_v0  ;;  %394 = vmatprep.subr.bf16.mxu1 %v533_v0 }
  0x4a   :  { %375 = vmatpush3.bf16.msra.mxu0 %v420_v7  ;;  %395 = vmatpush3.bf16.msra.mxu1 %v428_v12 }
  0x4b   :  { %376 = vmatprep.subr.bf16.mxu0 %v533_v0  ;;  %396 = vmatprep.subr.bf16.mxu1 %v533_v0 }
  0x4e   :  { %377 = vmatpush3.bf16.msra.mxu0 %v421_v9  ;;  %397 = vmatpush3.bf16.msra.mxu1 %v429_v16 }
  0x4f   :  { %378 = vmatprep.subr.bf16.mxu0 %v533_v0  ;;  %398 = vmatprep.subr.bf16.mxu1 %v533_v0 }
  0x52   :  { %379 = vmatpush3.bf16.msra.mxu0 %v422_v11  ;;  %399 = vmatpush3.bf16.msra.mxu1 %v430_v18 }
  0x53   :  { %380 = vmatprep.subr.bf16.mxu0 %v533_v0  ;;  %400 = vmatprep.subr.bf16.mxu1 %v533_v0 }
  0x56   :  { %381 = vmatpush3.bf16.msra.mxu0 %v423_v13  ;;  %401 = vmatpush3.bf16.msra.mxu1 %v431_v19 }
  0x59   :  { %383 = vmatmul.mubr.bf16.vlgmr.msra.gmra.mrb[0].mxu0 %v99_v17 }
 0x12c   :  { %v188_v21 = vpop.f32.mrb[0].mxu0 }
 0x12d   :  { %v189_v22 = vadd.f32 %v321_v20, %v188_v21  ;;  %v384_v23 = vpop.f32.mrb[1].mxu0 }
 0x12e   :  { %v191_v24 = vpop.f32.mrb[2].mxu0 }
 0x12f   :  { %v192_v25 = vadd.f32 %v321_v20, %v191_v24  ;;  %v385_v26 = vpop.f32.mrb[3].mxu0  ;;  %v195_v27 = vmax.f32 %v189_v22, 0.0 }
 0x131   :  { %v196_v28 = vmax.f32 %v192_v25, 0.0 }
 0x133   :  { %v197_v29 = vpack.c.bf16 %v196_v28, %v195_v27 }
 0x135   :  { %403 = vmatmul.mubr.bf16.vlgmr.msra.gmra.mrb[0].mxu1 %v197_v29 }
 0x208   :  { %v286_v31 = vpop.f32.mrb[0].mxu1 }
 0x209   :  { %v404_v32 = vpop.f32.mrb[1].mxu1  ;;  %v287_v34 = vadd.f32 %v330_v30, %v286_v31 }
 0x20a   :  { %v289_v33 = vpop.f32.mrb[2].mxu1 }
 0x20b   :  { %v290_v35 = vadd.f32 %v330_v30, %v289_v33  ;;  %v405_v36 = vpop.f32.mrb[3].mxu1 }
 0x20d   :  { %v346_v37 = vpack.c.bf16 %v290_v35, %v287_v34 }
 0x20f   :  { %347 = vst [vmem:[#allocation8] sm:$0xff] %v346_v37  }
 0x210   :  { %509 = shalt.err (!%p506_p0)
}
 0x211   :  { %s510_s14 = scalar_lea.hbm %s634_s5, 128 }
 0x212   :  { %p511_p1 = scmp.ne.s32.totalorder %s634_s5, %s510_s14  ;;  %p514_p2 = scmp.lt.u32.totalorder %s510_s14, %s634_s5 }
 0x214   :  { %p516_p3 = pnand %p514_p2, %p511_p1 }
 0x216   :  { %519 = shalt.err (!%p516_p3)
}
 0x217   :  { %314 = dma.vmem_to_hbm [thread:$0]  %s309_s12, 128, %s634_s5, [#allocation4], %s527_s28, %s527_s28, %s528_s29  }
 0x218   :  { %524 = dma.done.wait [#allocation4], 128  }
 0x219   :  { %525 = vsyncadd [#allocation4], 4294967168 }
 0x21a   :  { %318 = vsyncpa [#allocation3], 1 }
 0x21b   :  { %319 = vsyncpa [#allocation6], 1 }
 0x21c   :  { %320 = vsyncpa [#allocation4], 1 }

</bundles_post_ra>
